<compile_context>
chip_gen: v6e
topology: v6e:2x2x1
jax: 0.10.0
libtpu: 0.0.40
codegen_flags: <defaults>
</compile_context>

<pallas_src>
import jax
import jax.numpy as jnp
from jax.experimental import pallas as pl
from jax.experimental.pallas import tpu as pltpu

HIDDEN = 128
DEFAULT_BLOCK_B = 2048  # multiple of 8; sweep 1024/2048/4096 per generation


def _round_up(x, m):
    return ((x + m - 1) // m) * m


def distill_kernel(state_ref, w1_ref, b1_ref, w3_ref, b3_ref, out_ref):
    # state_ref: (TB, S) in input dtype   w1_ref: (S, 128) bf16
    # b1_ref:   (1, 128) f32              w3_ref: (128, 128) bf16
    # b3_ref:   (1, 128) f32              out_ref: (TB, 128)
    #
    # In-kernel bf16 cast (VPU has huge slack here; avoids a wrapper HBM pass).
    x = state_ref[...].astype(jnp.bfloat16)

    # fc1 on the MXU (bf16 x bf16 -> f32 accumulate), bias + ReLU in f32.
    h = jnp.dot(x, w1_ref[...], preferred_element_type=jnp.float32)
    h = jnp.maximum(h + b1_ref[...], 0.0)

    # fc3: cast activations back to bf16 for the MXU, accumulate in f32.
    o = jnp.dot(h.astype(jnp.bfloat16), w3_ref[...],
                preferred_element_type=jnp.float32)
    o = o + b3_ref[...]

    out_ref[...] = o.astype(out_ref.dtype)


def distill_forward(state, w1, b1, w3, b3, *, block_b=DEFAULT_BLOCK_B,
                    out_dtype=None):
    """state: (B, S); w1: (S,128); b1: (128,); w3: (128,128); b3: (128,).

    Weights are stored pre-transposed as [in_features, out_features].
    Returns (B, 128) in `out_dtype` (default: state.dtype).

    Numerics note (documented choice): MXU operands are bf16 with f32
    accumulation, slightly looser than the f32 PyTorch Linear layers.
    """
    B, S = state.shape
    if out_dtype is None:
        out_dtype = state.dtype

    # Batch tile: multiple of 8; single tile for small batches.
    tb = min(_round_up(block_b, 8), _round_up(B, 8))
    # v7x megacore: for large batches guarantee >=2 grid steps so both
    # TensorCores get work (no-op on 1-TC v5e/v6e).
    if B >= 1024:
        tb = min(tb, _round_up(pl.cdiv(B, 2), 8))
    grid = (pl.cdiv(B, tb),)  # partial last block handled by Pallas (masked stores)

    # Tiny weights: one-time bf16 cast (halves their HBM read). Biases stay f32.
    w1_in = w1.astype(jnp.bfloat16)
    w3_in = w3.astype(jnp.bfloat16)
    b1_2d = b1.reshape(1, HIDDEN).astype(jnp.float32)
    b3_2d = b3.reshape(1, HIDDEN).astype(jnp.float32)

    in_bytes = jnp.dtype(state.dtype).itemsize
    out_bytes = jnp.dtype(out_dtype).itemsize
    cost = pl.CostEstimate(
        flops=2 * B * HIDDEN * (S + HIDDEN),
        transcendentals=0,
        bytes_accessed=(B * S * in_bytes + B * HIDDEN * out_bytes
                        + (S * HIDDEN + HIDDEN * HIDDEN) * 2  # bf16 weights
                        + 2 * HIDDEN * 4),                    # f32 biases
    )

    out = pl.pallas_call(
        distill_kernel,
        out_shape=jax.ShapeDtypeStruct((B, HIDDEN), out_dtype),
        grid_spec=pltpu.PrefetchScalarGridSpec(
            num_scalar_prefetch=0,
            grid=grid,
            in_specs=[
                # Batch-tiled input marches with the grid.
                pl.BlockSpec((tb, S), lambda i: (i, 0)),
                # Weights / biases: same block every step -> VMEM resident.
                pl.BlockSpec((S, HIDDEN), lambda i: (0, 0)),
                pl.BlockSpec((1, HIDDEN), lambda i: (0, 0)),
                pl.BlockSpec((HIDDEN, HIDDEN), lambda i: (0, 0)),
                pl.BlockSpec((1, HIDDEN), lambda i: (0, 0)),
            ],
            out_specs=pl.BlockSpec((tb, HIDDEN), lambda i: (i, 0)),
        ),
        compiler_params=pltpu.CompilerParams(
            # Batch steps are independent -> megacore sharding on v7x.
            dimension_semantics=("parallel",),
        ),
        cost_estimate=cost,
    )(state, w1_in, b1_2d, w3_in, b3_2d)

    return out


def init_params(key, state_size):
    """Deterministic synthetic init (PyTorch-Linear-like uniform bounds)."""
    k1, k2, k3, k4, k5, k6 = jax.random.split(key, 6)
    bound1 = 1.0 / jnp.sqrt(state_size)
    bound3 = 1.0 / jnp.sqrt(HIDDEN)
    # Stored as [in_features, out_features] (transposed vs. torch Linear).
    w1 = jax.random.uniform(k1, (state_size, HIDDEN), jnp.float32, -bound1, bound1)
    b1 = jax.random.uniform(k2, (HIDDEN,), jnp.float32, -bound1, bound1)
    # fc2 exists in __init__ but is unused in forward; init anyway for parity.
    w2 = jax.random.uniform(k3, (HIDDEN, HIDDEN), jnp.float32, -bound3, bound3)
    b2 = jax.random.uniform(k4, (HIDDEN,), jnp.float32, -bound3, bound3)
    w3 = jax.random.uniform(k5, (HIDDEN, HIDDEN), jnp.float32, -bound3, bound3)
    b3 = jax.random.uniform(k6, (HIDDEN,), jnp.float32, -bound3, bound3)
    return w1, b1, w2, b2, w3, b3


if __name__ == "__main__":
    key = jax.random.PRNGKey(0)
    batch, state_size = 8, 32

    kp, kx = jax.random.split(key)
    w1, b1, w2, b2, w3, b3 = init_params(kp, state_size)
    state = jax.random.normal(kx, (batch, state_size), jnp.float32)

    out = distill_forward(state, w1, b1, w3, b3)
    jax.block_until_ready(out)

    # Pure-JAX f32 reference of the same semantics (bf16 MXU operands inside
    # the kernel -> loosened tolerance; documented numerics choice).
    ref = jnp.maximum(state @ w1 + b1, 0.0) @ w3 + b3
    assert out.shape == (batch, HIDDEN)
    assert jnp.allclose(out, ref, atol=2e-2, rtol=2e-2), (
        float(jnp.max(jnp.abs(out - ref))))

    # Exercise a non-tile-aligned, multi-step batch to check the cdiv grid and
    # masked partial-last-block stores (no wrapper pad/slice anymore).
    big_b = 300  # not a multiple of 8 or of the block size
    state_big = jax.random.normal(jax.random.PRNGKey(1),
                                  (big_b, state_size), jnp.float32)
    out_big = distill_forward(state_big, w1, b1, w3, b3, block_b=128)
    jax.block_until_ready(out_big)
    ref_big = jnp.maximum(state_big @ w1 + b1, 0.0) @ w3 + b3
    assert out_big.shape == (big_b, HIDDEN)
    assert jnp.allclose(out_big, ref_big, atol=2e-2, rtol=2e-2), (
        float(jnp.max(jnp.abs(out_big - ref_big))))

    print("KERNEL_OK")
</pallas_src>

<mosaic_0001>
module attributes {stable_mosaic.version = 11 : i64} {
  func.func @distill_kernel(%arg0: i32, %arg1: memref<8x32xf32, #tpu.memory_space<vmem>>, %arg2: memref<32x128xbf16, #tpu.memory_space<vmem>>, %arg3: memref<1x128xf32, #tpu.memory_space<vmem>>, %arg4: memref<128x128xbf16, #tpu.memory_space<vmem>>, %arg5: memref<1x128xf32, #tpu.memory_space<vmem>>, %arg6: memref<8x128xf32, #tpu.memory_space<vmem>>) attributes {dimension_semantics = [#tpu.dimension_semantics<parallel>], iteration_bounds = array<i64: 1>, scalar_prefetch = 0 : i64, scratch_operands = 0 : i64, tpu.core_type = #tpu.core_type<tc>, window_params = [{transform_indices = @transform_0, window_bounds = array<i64: 8, 32>}, {pipeline_mode = #tpu.pipeline_mode<synchronous>, transform_indices = @transform_1, window_bounds = array<i64: 32, 128>}, {pipeline_mode = #tpu.pipeline_mode<synchronous>, transform_indices = @transform_2, window_bounds = array<i64: 1, 128>}, {pipeline_mode = #tpu.pipeline_mode<synchronous>, transform_indices = @transform_3, window_bounds = array<i64: 128, 128>}, {pipeline_mode = #tpu.pipeline_mode<synchronous>, transform_indices = @transform_4, window_bounds = array<i64: 1, 128>}, {transform_indices = @transform_5, window_bounds = array<i64: 8, 128>}]} {
    %c0 = arith.constant 0 : index
    %c0_0 = arith.constant 0 : index
    %0 = vector.load %arg1[%c0, %c0_0] : memref<8x32xf32, #tpu.memory_space<vmem>>, vector<8x32xf32>
    %1 = arith.truncf %0 : vector<8x32xf32> to vector<8x32xbf16>
    %c0_1 = arith.constant 0 : index
    %c0_2 = arith.constant 0 : index
    %2 = vector.load %arg2[%c0_1, %c0_2] : memref<32x128xbf16, #tpu.memory_space<vmem>>, vector<32x128xbf16>
    %cst = arith.constant dense<0.000000e+00> : vector<8x128xf32>
    %3 = tpu.matmul %1, %2, %cst {dimension_numbers = #tpu.dot_dimension_numbers<[1], [0], [0], [1], [0, 0, 1, 1], [], []>} : vector<8x32xbf16>, vector<32x128xbf16>, vector<8x128xf32> -> vector<8x128xf32>
    %c0_3 = arith.constant 0 : index
    %c0_4 = arith.constant 0 : index
    %4 = vector.load %arg3[%c0_3, %c0_4] : memref<1x128xf32, #tpu.memory_space<vmem>>, vector<1x128xf32>
    %5 = vector.broadcast %4 : vector<1x128xf32> to vector<8x128xf32>
    %6 = arith.addf %3, %5 : vector<8x128xf32>
    %cst_5 = arith.constant 0.000000e+00 : f32
    %7 = vector.broadcast %cst_5 : f32 to vector<8x128xf32>
    %8 = arith.maximumf %6, %7 : vector<8x128xf32>
    %9 = arith.truncf %8 : vector<8x128xf32> to vector<8x128xbf16>
    %c0_6 = arith.constant 0 : index
    %c0_7 = arith.constant 0 : index
    %10 = vector.load %arg4[%c0_6, %c0_7] : memref<128x128xbf16, #tpu.memory_space<vmem>>, vector<128x128xbf16>
    %cst_8 = arith.constant dense<0.000000e+00> : vector<8x128xf32>
    %11 = tpu.matmul %9, %10, %cst_8 {dimension_numbers = #tpu.dot_dimension_numbers<[1], [0], [0], [1], [0, 0, 1, 1], [], []>} : vector<8x128xbf16>, vector<128x128xbf16>, vector<8x128xf32> -> vector<8x128xf32>
    %c0_9 = arith.constant 0 : index
    %c0_10 = arith.constant 0 : index
    %12 = vector.load %arg5[%c0_9, %c0_10] : memref<1x128xf32, #tpu.memory_space<vmem>>, vector<1x128xf32>
    %13 = vector.broadcast %12 : vector<1x128xf32> to vector<8x128xf32>
    %14 = arith.addf %11, %13 : vector<8x128xf32>
    %c0_11 = arith.constant 0 : index
    %c0_12 = arith.constant 0 : index
    %15 = vector.load %arg6[%c0_11, %c0_12] : memref<8x128xf32, #tpu.memory_space<vmem>>, vector<8x128xf32>
    tpu.vector_store %arg6[%c0_11, %c0_12], %14 {strides = array<i32>} : memref<8x128xf32, #tpu.memory_space<vmem>>, vector<8x128xf32>,
    return
  }
  func.func @transform_0(%arg0: i32) -> (i32, i32) {
    %c0_i32 = arith.constant 0 : i32
    %c0_i32_0 = arith.constant 0 : i32
    return %arg0, %c0_i32 : i32, i32
  }
  func.func @transform_1(%arg0: i32) -> (i32, i32) {
    %c0_i32 = arith.constant 0 : i32
    %c0_i32_0 = arith.constant 0 : i32
    %c0_i32_1 = arith.constant 0 : i32
    return %c0_i32, %c0_i32_0 : i32, i32
  }
  func.func @transform_2(%arg0: i32) -> (i32, i32) {
    %c0_i32 = arith.constant 0 : i32
    %c0_i32_0 = arith.constant 0 : i32
    %c0_i32_1 = arith.constant 0 : i32
    return %c0_i32, %c0_i32_0 : i32, i32
  }
  func.func @transform_3(%arg0: i32) -> (i32, i32) {
    %c0_i32 = arith.constant 0 : i32
    %c0_i32_0 = arith.constant 0 : i32
    %c0_i32_1 = arith.constant 0 : i32
    return %c0_i32, %c0_i32_0 : i32, i32
  }
  func.func @transform_4(%arg0: i32) -> (i32, i32) {
    %c0_i32 = arith.constant 0 : i32
    %c0_i32_0 = arith.constant 0 : i32
    %c0_i32_1 = arith.constant 0 : i32
    return %c0_i32, %c0_i32_0 : i32, i32
  }
  func.func @transform_5(%arg0: i32) -> (i32, i32) {
    %c0_i32 = arith.constant 0 : i32
    %c0_i32_0 = arith.constant 0 : i32
    return %arg0, %c0_i32 : i32, i32
  }
}

</mosaic_0001>

<bundles_post_ra>
// kernel: tpu_custom_call.1
= control target key start
LH: loop header
LB: loop body
LE: loop exit
PB: predicated region body
PF: predicated region fallthrough
CT: control target
= control target key end

     0   :  { %10 = vsyncpa [#allocation3], 0  ;;  %s473_s0 = inlined_call_operand.hbm [shape: f32[8,32], index: 0, kind: input, shape index: {}]   ;;  %s474_s1 = inlined_call_operand.hbm [shape: bf16[32,128], index: 1, kind: input, shape index: {}]   ;;  %s475_s2 = inlined_call_operand.vmem [shape: f32[1,128], index: 2, kind: input, shape index: {}]   ;;  %s476_s3 = inlined_call_operand.hbm [shape: bf16[128,128], index: 3, kind: input, shape index: {}]   ;;  %s477_s4 = inlined_call_operand.vmem [shape: f32[1,128], index: 4, kind: input, shape index: {}]   ;;  %s478_s5 = inlined_call_operand.hbm [shape: f32[8,128], index: 5, kind: output, shape index: {}]  }
   0x1   :  { %11 = vsyncpa [#allocation6], 0 }
   0x2   :  { %12 = vsyncpa [#allocation4], 0  ;;  %s417_s18 = smov [#allocation5]  }
   0x3   :  { %s28_s19 = sshll.u32 %s417_s18, 4  ;;  %s29_s19 = int_to_ptr.vmem [resolvable:$true] %s28_s19 }
   0x4   :  { %s339_s20 = scalar_lea.vmem %s29_s19, 256  ;;  %p344_p1 = scmp.lt.s32.totalorder %s29_s19, %s29_s19 }
   0x5   :  { %p340_p0 = scmp.ne.s32.totalorder %s29_s19, %s339_s20  ;;  %p345_p2 = scmp.lt.s32.totalorder %s339_s20, %s339_s20 }
   0x7   :  { %p346_p3 = por %p345_p2, %p344_p1 }
   0x9   :  { %p347_p4 = pnand %p346_p3, %p340_p0 }
   0xb   :  { %350 = shalt.err (!%p347_p4)
}
   0xc   :  { %s418_s21 = smov 64   ;;  %s419_s22 = smov 4  }
   0xd   :  { %34 = dma.hbm_to_vmem [thread:$0]  %s474_s1, 256, %s29_s19, [#allocation6], %s418_s21, %s418_s21, %s419_s22  }
   0xe   :  { %s420_s25 = smov [#allocation2]   ;;  %s421_s27 = smov [#allocation7]  }
   0xf   :  { %s19_s26 = sshll.u32 %s420_s25, 4  ;;  %s42_s28 = sshll.u32 %s421_s27, 4  ;;  %s20_s26 = int_to_ptr.vmem [resolvable:$true] %s19_s26  ;;  %s43_s28 = int_to_ptr.vmem [resolvable:$true] %s42_s28 }
  0x10   :  { %s359_s29 = scalar_lea.vmem %s20_s26, 128  ;;  %p364_p6 = scmp.lt.s32.totalorder %s20_s26, %s20_s26 }
  0x11   :  { %p360_p5 = scmp.ne.s32.totalorder %s20_s26, %s359_s29  ;;  %p365_p7 = scmp.lt.s32.totalorder %s359_s29, %s359_s29 }
  0x13   :  { %p366_p8 = por %p365_p7, %p364_p6 }
  0x15   :  { %p367_p9 = pnand %p366_p8, %p360_p5 }
  0x17   :  { %370 = shalt.err (!%p367_p9)
}
  0x18   :  { %22 = dma.hbm_to_vmem [thread:$0]  %s473_s0, 128, %s20_s26, [#allocation3]  }
  0x19   :  { %s379_s7 = scalar_lea.vmem %s43_s28, 1024  ;;  %p384_p11 = scmp.lt.s32.totalorder %s43_s28, %s43_s28 }
  0x1a   :  { %p380_p10 = scmp.ne.s32.totalorder %s43_s28, %s379_s7  ;;  %p385_p12 = scmp.lt.s32.totalorder %s379_s7, %s379_s7 }
  0x1c   :  { %p386_p13 = por %p385_p12, %p384_p11 }
  0x1e   :  { %p387_p0 = pnand %p386_p13, %p380_p10 }
  0x20   :  { %390 = shalt.err (!%p387_p0)
}
  0x21   :  { %48 = dma.hbm_to_vmem [thread:$0]  %s476_s3, 1024, %s43_s28, [#allocation6], %s418_s21, %s418_s21, %s419_s22  }
  0x22   :  { %411 = dma.done.wait [#allocation3], 128  }
  0x23   :  { %412 = vsyncadd [#allocation3], 4294967168 }
  0x24   :  { %413 = dma.done.wait [#allocation6], 1280  }
  0x25   :  { %414 = vsyncadd [#allocation6], 4294966016  ;;  %v422_v0 = vmov 0.0   ;;  %vm423_vm0 = vmmov 0   ;;  %v321_v1 = vld [vmem:[#allocation5 + $0x8] sm:$0xff]   ;;  %v322_v2 = vld [vmem:[#allocation5] sm:$0xff]  }
  0x26   :  { %285 = vmatprep.subr.bf16.mxu0 %v422_v0  ;;  %289 = vmatprep.mubr.msk.bf16.mxu0 %vm423_vm0, %v422_v0  ;;  %v61_v3 = vld [vmem:[#allocation2] sm:$0xff]  ;;  %v323_v4 = vld [vmem:[#allocation7 + $0x38] sm:$0xff]   ;;  %v324_v6 = vld [vmem:[#allocation7 + $0x30] sm:$0xff]   ;;  %vm86_vm1 = vcmask 261120   ;;  %s424_s11 = smov [#allocation8]  }
  0x27   :  { %293 = vmatprep.subr.bf16.mxu1 %v422_v0  ;;  %309 = vmatprep.mubr.msk.bf16.mxu1 %vm423_vm0, %v422_v0  ;;  %v62_v5 = vpack.c.bf16 %v61_v3, %v61_v3  ;;  %v325_v7 = vld [vmem:[#allocation7 + $0x28] sm:$0xff]   ;;  %v326_v8 = vld [vmem:[#allocation7 + $0x20] sm:$0xff]   ;;  %v327_v9 = vld [vmem:[#allocation7 + $0x18] sm:$0xff]   ;;  %s250_s12 = sshll.u32 %s424_s11, 4  ;;  %s251_s12 = int_to_ptr.vmem [resolvable:$true] %s250_s12 }
  0x28   :  { %286 = vmatpush3.bf16.msra.mxu0 %v321_v1  ;;  %294 = vmatpush3.bf16.msra.mxu1 %v323_v4  ;;  %v328_v10 = vld [vmem:[#allocation7 + $0x10] sm:$0xff]   ;;  %v329_v11 = vld [vmem:[#allocation7 + $0x8] sm:$0xff]   ;;  %v330_v12 = vld [vmem:[#allocation7] sm:$0xff]   ;;  %p396_p2 = scmp.lt.s32.totalorder %s251_s12, %s251_s12 }
  0x29   :  { %287 = vmatprep.subr.bf16.mxu0 %v422_v0  ;;  %295 = vmatprep.subr.bf16.mxu1 %v422_v0  ;;  %v260_v13 = vld [vmem:[%s475_s2] ss:$0 sm:$0xff]  ;;  %s391_s2 = scalar_lea.vmem %s251_s12, 128 }
  0x2a   :  { %v264_v21 = vld [vmem:[%s477_s4] ss:$0 sm:$0xff]  ;;  %p392_p1 = scmp.ne.s32.totalorder %s251_s12, %s391_s2  ;;  %p397_p3 = scmp.lt.s32.totalorder %s391_s2, %s391_s2 }
  0x2c   :  { %288 = vmatpush3.bf16.msra.mxu0 %v322_v2  ;;  %296 = vmatpush3.bf16.msra.mxu1 %v324_v6  ;;  %p398_p4 = por %p397_p3, %p396_p2 }
  0x2d   :  { %297 = vmatprep.subr.bf16.mxu1 %v422_v0 }
  0x2e   :  { %p399_p5 = pnand %p398_p4, %p392_p1 }
  0x2f   :  { %290 = vmatmul.mubr.msk.bf16.vlgmr.msra.gmra.mxu0 %vm86_vm1, %v62_v5 }
  0x30   :  { %298 = vmatpush3.bf16.msra.mxu1 %v325_v7 }
  0x31   :  { %299 = vmatprep.subr.bf16.mxu1 %v422_v0 }
  0x34   :  { %300 = vmatpush3.bf16.msra.mxu1 %v326_v8 }
  0x35   :  { %301 = vmatprep.subr.bf16.mxu1 %v422_v0 }
  0x38   :  { %302 = vmatpush3.bf16.msra.mxu1 %v327_v9 }
  0x39   :  { %303 = vmatprep.subr.bf16.mxu1 %v422_v0 }
  0x3c   :  { %304 = vmatpush3.bf16.msra.mxu1 %v328_v10 }
  0x3d   :  { %305 = vmatprep.subr.bf16.mxu1 %v422_v0 }
  0x40   :  { %306 = vmatpush3.bf16.msra.mxu1 %v329_v11 }
  0x41   :  { %307 = vmatprep.subr.bf16.mxu1 %v422_v0 }
  0x44   :  { %308 = vmatpush3.bf16.msra.mxu1 %v330_v12 }
  0xef   :  { %v124_v14 = vpop.f32.mrf.mxu0 }
  0xf0   :  { %v125_v15 = vadd.f32 %v260_v13, %v124_v14 }
  0xf1   :  { %v291_v16 = vpop.f32.mrf.mxu0 }
  0xf2   :  { %v130_v17 = vmax.f32 %v125_v15, 0.0 }
  0xf3   :  { %v127_v18 = vpop.f32.mrf.mxu0 }
  0xf4   :  { %v131_v19 = vpack.c.bf16 %v130_v17, %v130_v17 }
  0xf5   :  { %v292_v20 = vpop.f32.mrf.mxu0 }
  0xf6   :  { %310 = vmatmul.mubr.bf16.vlgmr.msra.gmra.mxu1 %v131_v19 }
 0x1b6   :  { %v237_v22 = vpop.f32.mrf.mxu1 }
 0x1b7   :  { %v238_v23 = vadd.f32 %v264_v21, %v237_v22 }
 0x1b8   :  { %v311_v24 = vpop.f32.mrf.mxu1 }
 0x1b9   :  { %243 = vst [vmem:[#allocation8] sm:$0xff] %v238_v23 }
 0x1ba   :  { %v240_v25 = vpop.f32.mrf.mxu1 }
 0x1bb   :  { %402 = shalt.err (!%p399_p5)
}
 0x1bc   :  { %253 = dma.vmem_to_hbm [thread:$0]  %s251_s12, 128, %s478_s5, [#allocation4]   ;;  %v312_v26 = vpop.f32.mrf.mxu1 }
 0x1bd   :  { %415 = dma.done.wait [#allocation4], 128  }
 0x1be   :  { %416 = vsyncadd [#allocation4], 4294967168 }
 0x1bf   :  { %257 = vsyncpa [#allocation3], 1 }
 0x1c0   :  { %258 = vsyncpa [#allocation6], 1 }
 0x1c1   :  { %259 = vsyncpa [#allocation4], 1 }

</bundles_post_ra>
